<compile_context>
chip_gen: v7x
topology: tpu7x:2x2x1
jax: 0.10.0
libtpu: 0.0.40
codegen_flags: <defaults>
</compile_context>

<pallas_src>
import math

import jax
import jax.numpy as jnp
from jax.experimental import pallas as pl
from jax.experimental.pallas import tpu as pltpu

# ---- small synthetic shapes consistent with the module's forward ----
B, S, H = 2, 8, 32          # batch, sequence length, hidden size
NUM_HEADS = 2
HEAD_DIM = H // NUM_HEADS
FFN = 64                    # intermediate size
VOCAB = 100
NUM_CLASSES = 3             # len(LABEL2ID)
PAD = 128                   # lane-dense padding width
W_ROWS = 3 * H + FFN + H    # rows of the packed bf16 weight slab (= 192)


def _layernorm(x, g, b, eps=1e-12):
    mu = jnp.mean(x, axis=-1, keepdims=True)
    var = jnp.mean((x - mu) ** 2, axis=-1, keepdims=True)
    return (x - mu) * jax.lax.rsqrt(var + eps) * g + b


def _softmax_lastdim(s):
    m = jnp.max(s, axis=-1, keepdims=True)
    e = jnp.exp(s - m)                                    # EUP
    return e * pl.reciprocal(jnp.sum(e, axis=-1, keepdims=True), approx=True)


# --------------------------------------------------------------------------
# Fused Pallas kernel: encoder layer + (eval) dropout + token classifier
#   x_ref    : (B*S, H)       f32  embedded + position-added tokens
#   bias_ref : (B*S, B*S)     f32  additive block-diag + key-padding mask bias
#   w_ref    : (W_ROWS, 128)  bf16 packed matmul weights
#              rows [0:H)        -> W_qkv (cols: Q|K|V, Q pre-scaled, pad to 128)
#              rows [H:2H)       -> W_o   (cols 0:H)
#              rows [2H:3H)      -> W1    (cols 0:FFN)
#              rows [3H:3H+FFN)  -> W2    (cols 0:H)
#              rows [3H+FFN:end) -> W_clf (cols 0:128, real classes in 0:3)
#   pf_ref   : (16, 128)      f32  one param per row:
#              0 ln0_g  1 ln0_b  2 ln1_g  3 ln1_b  4 ln2_g  5 ln2_b
#              6 b_qkv(96, Q-part pre-scaled)  7 b_o  8 b1  9 b2  10 b_clf(128)
#   out_ref  : (B*S, 128)     f32  lane-dense logits slab
# --------------------------------------------------------------------------
def fused_kernel(x_ref, bias_ref, w_ref, pf_ref, out_ref):
    pf = pf_ref[...]                                           # (16, 128) f32

    # embedding LayerNorm (f32 elementwise)
    x = _layernorm(x_ref[...], pf[0:1, :H], pf[1:2, :H])       # (B*S, H) f32
    xb = x.astype(jnp.bfloat16)                                # single bf16 cast

    # ---- fused QKV projection: one wide lane-dense matmul ----
    qkv = jnp.dot(xb, w_ref[0:H, :], preferred_element_type=jnp.float32)   # (16,128)
    qkv = (qkv[:, :3 * H] + pf[6:7, :3 * H]).astype(jnp.bfloat16)          # (16,96) bf16

    bias = bias_ref[...]                                       # (16,16) f32

    # ---- 2-D block-diagonal attention, static 2-iteration head loop ----
    ctx_heads = []
    for h in range(NUM_HEADS):                                 # static, unrolled
        q = qkv[:, h * HEAD_DIM:(h + 1) * HEAD_DIM]                        # (16,16)
        k = qkv[:, H + h * HEAD_DIM:H + (h + 1) * HEAD_DIM]                # (16,16)
        v = qkv[:, 2 * H + h * HEAD_DIM:2 * H + (h + 1) * HEAD_DIM]        # (16,16)

        # scores = Q K^T, contracting dim 1 of both operands (no transpose op);
        # scale is already folded into the Q weights/bias.
        s = jax.lax.dot_general(q, k, (((1,), (1,)), ((), ())),
                                preferred_element_type=jnp.float32) + bias
        p = _softmax_lastdim(s)                                # f32 softmax
        ctx_heads.append(jnp.dot(p.astype(jnp.bfloat16), v,
                                 preferred_element_type=jnp.float32))      # (16,16)

    ctx = jnp.concatenate(ctx_heads, axis=-1)                  # (16, H) f32

    # single fused output projection over the re-concatenated heads
    attn = jnp.dot(ctx.astype(jnp.bfloat16), w_ref[H:2 * H, :H],
                   preferred_element_type=jnp.float32) + pf[7:8, :H]

    y = _layernorm(x + attn, pf[2:3, :H], pf[3:4, :H])

    # ---- FFN ----
    yb = y.astype(jnp.bfloat16)
    h1 = jnp.dot(yb, w_ref[2 * H:3 * H, :FFN],
                 preferred_element_type=jnp.float32) + pf[8:9, :FFN]
    # TODO(synk): HF BERT uses exact erf GELU; tanh approximation used here.
    h1 = jax.nn.gelu(h1, approximate=True)
    h2 = jnp.dot(h1.astype(jnp.bfloat16), w_ref[3 * H:3 * H + FFN, :H],
                 preferred_element_type=jnp.float32) + pf[9:10, :H]

    seq = _layernorm(y + h2, pf[4:5, :H], pf[5:6, :H])         # encoder output

    # Dropout(p=0.5) is identity at inference time.
    # TODO(synk): training-mode dropout would use pltpu.prng_seed/prng_random_bits.
    # Fused classifier head; lane-dense (B*S, 128) unmasked stores.
    out_ref[...] = jnp.dot(seq.astype(jnp.bfloat16),
                           w_ref[3 * H + FFN:3 * H + FFN + H, :],
                           preferred_element_type=jnp.float32) + pf[10:11, :]


# --------------------------------------------------------------------------
# Wrapper
# --------------------------------------------------------------------------
@jax.jit
def token_clf_forward(input_ids, mask, p):
    # Embedding gather + position add is glue: plain JAX.
    x_emb = jnp.take(p["word_emb"], input_ids, axis=0) + p["pos_emb"][None, :, :]
    x_flat = x_emb.reshape(B * S, H)

    # Compact combined attention bias (B*S, B*S):
    #   0 where (same batch AND key token valid), -1e9 elsewhere.
    tok_batch = jnp.repeat(jnp.arange(B, dtype=jnp.int32), S)          # (B*S,)
    same_batch = tok_batch[:, None] == tok_batch[None, :]
    valid_key = mask.reshape(B * S) > 0.5
    attn_bias = jnp.where(same_batch & valid_key[None, :],
                          0.0, -1e9).astype(jnp.float32)               # (16,16)

    vmem = pl.BlockSpec(memory_space=pltpu.MemorySpace.VMEM)   # whole array in VMEM
    logits_pad = pl.pallas_call(
        fused_kernel,
        out_shape=jax.ShapeDtypeStruct((B * S, PAD), jnp.float32),
        in_specs=[vmem] * 4,
        out_specs=vmem,
    )(x_flat, attn_bias, p["w_slab"], p["pf_slab"])

    return logits_pad.reshape(B, S, PAD)[:, :, :NUM_CLASSES]


# --------------------------------------------------------------------------
# Deterministic parameter init: weights packed into one bf16 slab (lane-dense,
# 1/sqrt(Dh) folded into the Q columns) + one f32 LN/bias slab.
# --------------------------------------------------------------------------
def init_params(key):
    ks = jax.random.split(key, 10)

    def dense(k, fi, fo):
        return jax.random.normal(k, (fi, fo), jnp.float32) * 0.02

    wq, wk, wv = dense(ks[2], H, H), dense(ks[3], H, H), dense(ks[4], H, H)
    wo = dense(ks[5], H, H)
    w1 = dense(ks[6], H, FFN)
    w2 = dense(ks[7], FFN, H)
    w_clf = dense(ks[8], H, NUM_CLASSES)

    scale = 1.0 / math.sqrt(HEAD_DIM)
    bq = jnp.zeros((H,), jnp.float32)
    bk = jnp.zeros((H,), jnp.float32)
    bv = jnp.zeros((H,), jnp.float32)

    # --- bf16 weight slab: [W_qkv | W_o | W1 | W2 | W_clf], all lane-padded to 128
    w_slab = jnp.zeros((W_ROWS, PAD), jnp.float32)
    w_slab = w_slab.at[0:H, 0:H].set(wq * scale)               # Q (pre-scaled)
    w_slab = w_slab.at[0:H, H:2 * H].set(wk)                   # K
    w_slab = w_slab.at[0:H, 2 * H:3 * H].set(wv)               # V
    w_slab = w_slab.at[H:2 * H, 0:H].set(wo)                   # W_o
    w_slab = w_slab.at[2 * H:3 * H, 0:FFN].set(w1)             # W1
    w_slab = w_slab.at[3 * H:3 * H + FFN, 0:H].set(w2)         # W2
    w_slab = w_slab.at[3 * H + FFN:3 * H + FFN + H, 0:NUM_CLASSES].set(w_clf)
    w_slab = w_slab.astype(jnp.bfloat16)

    # --- f32 param slab: LN gamma/beta + biases, one param per row
    pf = jnp.zeros((16, PAD), jnp.float32)
    pf = pf.at[0, :H].set(1.0)                                 # ln0_g
    pf = pf.at[2, :H].set(1.0)                                 # ln1_g
    pf = pf.at[4, :H].set(1.0)                                 # ln2_g
    pf = pf.at[6, 0:H].set(bq * scale)                         # b_q (pre-scaled)
    pf = pf.at[6, H:2 * H].set(bk)                             # b_k
    pf = pf.at[6, 2 * H:3 * H].set(bv)                         # b_v
    # rows 1,3,5 (ln betas), 7 (b_o), 8 (b1), 9 (b2), 10 (b_clf) stay zero

    return dict(
        word_emb=jax.random.normal(ks[0], (VOCAB, H), jnp.float32) * 0.02,
        pos_emb=jax.random.normal(ks[1], (S, H), jnp.float32) * 0.02,
        w_slab=w_slab,
        pf_slab=pf,
    )


if __name__ == "__main__":
    key = jax.random.PRNGKey(0)
    k_param, k_ids = jax.random.split(key)
    params = init_params(k_param)

    input_ids = jax.random.randint(k_ids, (B, S), 0, VOCAB, dtype=jnp.int32)
    # attention mask: batch 0 fully valid, batch 1 has the last 2 tokens padded
    lengths = jnp.array([[S], [S - 2]], dtype=jnp.int32)
    mask = (jnp.arange(S, dtype=jnp.int32)[None, :] < lengths).astype(jnp.float32)

    logits = token_clf_forward(input_ids, mask, params)
    logits = jax.block_until_ready(logits)

    assert logits.shape == (B, S, NUM_CLASSES)
    assert logits.dtype == jnp.float32
    print("KERNEL_OK")
</pallas_src>

<mosaic_0001>
module attributes {stable_mosaic.version = 11 : i64} {
  func.func @fused_kernel(%arg0: memref<16x32xf32, #tpu.memory_space<vmem>>, %arg1: memref<16x16xf32, #tpu.memory_space<vmem>>, %arg2: memref<192x128xbf16, #tpu.memory_space<vmem>>, %arg3: memref<16x128xf32, #tpu.memory_space<vmem>>, %arg4: memref<16x128xf32, #tpu.memory_space<vmem>>) attributes {dimension_semantics = [], scalar_prefetch = 0 : i64, scratch_operands = 0 : i64, tpu.core_type = #tpu.core_type<tc>} {
    %c0 = arith.constant 0 : index
    %c0_0 = arith.constant 0 : index
    %0 = vector.load %arg3[%c0, %c0_0] : memref<16x128xf32, #tpu.memory_space<vmem>>, vector<16x128xf32>
    %c0_1 = arith.constant 0 : index
    %c0_2 = arith.constant 0 : index
    %1 = vector.load %arg0[%c0_1, %c0_2] : memref<16x32xf32, #tpu.memory_space<vmem>>, vector<16x32xf32>
    %2 = vector.extract_strided_slice %0 {offsets = [0, 0], sizes = [1, 32], strides = [1, 1]} : vector<16x128xf32> to vector<1x32xf32>
    %3 = vector.extract_strided_slice %0 {offsets = [1, 0], sizes = [1, 32], strides = [1, 1]} : vector<16x128xf32> to vector<1x32xf32>
    %cst = arith.constant dense<0.000000e+00> : vector<16xf32>
    %4 = vector.multi_reduction <add>, %1, %cst [1] : vector<16x32xf32> to vector<16xf32>
    %5 = vector.shape_cast %4 : vector<16xf32> to vector<16x1xf32>
    %cst_3 = arith.constant 3.200000e+01 : f32
    %6 = vector.broadcast %cst_3 : f32 to vector<16x1xf32>
    %7 = arith.divf %5, %6 : vector<16x1xf32>
    %8 = vector.broadcast %7 : vector<16x1xf32> to vector<16x32xf32>
    %9 = arith.subf %1, %8 : vector<16x32xf32>
    %10 = arith.mulf %9, %9 : vector<16x32xf32>
    %cst_4 = arith.constant dense<0.000000e+00> : vector<16xf32>
    %11 = vector.multi_reduction <add>, %10, %cst_4 [1] : vector<16x32xf32> to vector<16xf32>
    %12 = vector.shape_cast %11 : vector<16xf32> to vector<16x1xf32>
    %cst_5 = arith.constant 3.200000e+01 : f32
    %13 = vector.broadcast %cst_5 : f32 to vector<16x1xf32>
    %14 = arith.divf %12, %13 : vector<16x1xf32>
    %15 = vector.broadcast %7 : vector<16x1xf32> to vector<16x32xf32>
    %16 = arith.subf %1, %15 : vector<16x32xf32>
    %cst_6 = arith.constant 9.99999996E-13 : f32
    %17 = vector.broadcast %cst_6 : f32 to vector<16x1xf32>
    %18 = arith.addf %14, %17 : vector<16x1xf32>
    %19 = math.rsqrt %18 : vector<16x1xf32>
    %20 = vector.broadcast %19 : vector<16x1xf32> to vector<16x32xf32>
    %21 = arith.mulf %16, %20 : vector<16x32xf32>
    %22 = vector.broadcast %2 : vector<1x32xf32> to vector<16x32xf32>
    %23 = arith.mulf %21, %22 : vector<16x32xf32>
    %24 = vector.broadcast %3 : vector<1x32xf32> to vector<16x32xf32>
    %25 = arith.addf %23, %24 : vector<16x32xf32>
    %26 = arith.truncf %25 : vector<16x32xf32> to vector<16x32xbf16>
    %c0_7 = arith.constant 0 : index
    %c0_8 = arith.constant 0 : index
    %27 = vector.load %arg2[%c0_7, %c0_8] : memref<192x128xbf16, #tpu.memory_space<vmem>>, vector<32x128xbf16>
    %cst_9 = arith.constant dense<0.000000e+00> : vector<16x128xf32>
    %28 = tpu.matmul %26, %27, %cst_9 {dimension_numbers = #tpu.dot_dimension_numbers<[1], [0], [0], [1], [0, 0, 1, 1], [], []>} : vector<16x32xbf16>, vector<32x128xbf16>, vector<16x128xf32> -> vector<16x128xf32>
    %29 = vector.extract_strided_slice %28 {offsets = [0, 0], sizes = [16, 96], strides = [1, 1]} : vector<16x128xf32> to vector<16x96xf32>
    %30 = vector.extract_strided_slice %0 {offsets = [6, 0], sizes = [1, 96], strides = [1, 1]} : vector<16x128xf32> to vector<1x96xf32>
    %31 = vector.broadcast %30 : vector<1x96xf32> to vector<16x96xf32>
    %32 = arith.addf %29, %31 : vector<16x96xf32>
    %33 = arith.truncf %32 : vector<16x96xf32> to vector<16x96xbf16>
    %c0_10 = arith.constant 0 : index
    %c0_11 = arith.constant 0 : index
    %34 = vector.load %arg1[%c0_10, %c0_11] : memref<16x16xf32, #tpu.memory_space<vmem>>, vector<16x16xf32>
    %35 = vector.extract_strided_slice %33 {offsets = [0, 0], sizes = [16, 16], strides = [1, 1]} : vector<16x96xbf16> to vector<16x16xbf16>
    %36 = vector.extract_strided_slice %33 {offsets = [0, 32], sizes = [16, 16], strides = [1, 1]} : vector<16x96xbf16> to vector<16x16xbf16>
    %37 = vector.extract_strided_slice %33 {offsets = [0, 64], sizes = [16, 16], strides = [1, 1]} : vector<16x96xbf16> to vector<16x16xbf16>
    %cst_12 = arith.constant dense<0.000000e+00> : vector<16x16xf32>
    %38 = tpu.matmul %35, %36, %cst_12 {dimension_numbers = #tpu.dot_dimension_numbers<[1], [1], [0], [0], [0, 0, 1, 0], [], []>} : vector<16x16xbf16>, vector<16x16xbf16>, vector<16x16xf32> -> vector<16x16xf32>
    %39 = arith.addf %38, %34 : vector<16x16xf32>
    %cst_13 = arith.constant dense<0xFF800000> : vector<16xf32>
    %40 = vector.multi_reduction <maximumf>, %39, %cst_13 [1] : vector<16x16xf32> to vector<16xf32>
    %41 = vector.shape_cast %40 : vector<16xf32> to vector<16x1xf32>
    %42 = vector.broadcast %41 : vector<16x1xf32> to vector<16x16xf32>
    %43 = arith.subf %39, %42 : vector<16x16xf32>
    %44 = math.exp %43 : vector<16x16xf32>
    %cst_14 = arith.constant dense<0.000000e+00> : vector<16xf32>
    %45 = vector.multi_reduction <add>, %44, %cst_14 [1] : vector<16x16xf32> to vector<16xf32>
    %46 = vector.shape_cast %45 : vector<16xf32> to vector<16x1xf32>
    %47 = tpu.reciprocal %46 {approx = true} : vector<16x1xf32> -> vector<16x1xf32>
    %48 = vector.broadcast %47 : vector<16x1xf32> to vector<16x16xf32>
    %49 = arith.mulf %44, %48 : vector<16x16xf32>
    %50 = arith.truncf %49 : vector<16x16xf32> to vector<16x16xbf16>
    %cst_15 = arith.constant dense<0.000000e+00> : vector<16x16xf32>
    %51 = tpu.matmul %50, %37, %cst_15 {dimension_numbers = #tpu.dot_dimension_numbers<[1], [0], [0], [1], [0, 0, 1, 1], [], []>} : vector<16x16xbf16>, vector<16x16xbf16>, vector<16x16xf32> -> vector<16x16xf32>
    %52 = vector.extract_strided_slice %33 {offsets = [0, 16], sizes = [16, 16], strides = [1, 1]} : vector<16x96xbf16> to vector<16x16xbf16>
    %53 = vector.extract_strided_slice %33 {offsets = [0, 48], sizes = [16, 16], strides = [1, 1]} : vector<16x96xbf16> to vector<16x16xbf16>
    %54 = vector.extract_strided_slice %33 {offsets = [0, 80], sizes = [16, 16], strides = [1, 1]} : vector<16x96xbf16> to vector<16x16xbf16>
    %cst_16 = arith.constant dense<0.000000e+00> : vector<16x16xf32>
    %55 = tpu.matmul %52, %53, %cst_16 {dimension_numbers = #tpu.dot_dimension_numbers<[1], [1], [0], [0], [0, 0, 1, 0], [], []>} : vector<16x16xbf16>, vector<16x16xbf16>, vector<16x16xf32> -> vector<16x16xf32>
    %56 = arith.addf %55, %34 : vector<16x16xf32>
    %cst_17 = arith.constant dense<0xFF800000> : vector<16xf32>
    %57 = vector.multi_reduction <maximumf>, %56, %cst_17 [1] : vector<16x16xf32> to vector<16xf32>
    %58 = vector.shape_cast %57 : vector<16xf32> to vector<16x1xf32>
    %59 = vector.broadcast %58 : vector<16x1xf32> to vector<16x16xf32>
    %60 = arith.subf %56, %59 : vector<16x16xf32>
    %61 = math.exp %60 : vector<16x16xf32>
    %cst_18 = arith.constant dense<0.000000e+00> : vector<16xf32>
    %62 = vector.multi_reduction <add>, %61, %cst_18 [1] : vector<16x16xf32> to vector<16xf32>
    %63 = vector.shape_cast %62 : vector<16xf32> to vector<16x1xf32>
    %64 = tpu.reciprocal %63 {approx = true} : vector<16x1xf32> -> vector<16x1xf32>
    %65 = vector.broadcast %64 : vector<16x1xf32> to vector<16x16xf32>
    %66 = arith.mulf %61, %65 : vector<16x16xf32>
    %67 = arith.truncf %66 : vector<16x16xf32> to vector<16x16xbf16>
    %cst_19 = arith.constant dense<0.000000e+00> : vector<16x16xf32>
    %68 = tpu.matmul %67, %54, %cst_19 {dimension_numbers = #tpu.dot_dimension_numbers<[1], [0], [0], [1], [0, 0, 1, 1], [], []>} : vector<16x16xbf16>, vector<16x16xbf16>, vector<16x16xf32> -> vector<16x16xf32>
    %69 = tpu.concatenate %51, %68 in 1 : vector<16x16xf32>, vector<16x16xf32> -> vector<16x32xf32>
    %70 = arith.truncf %69 : vector<16x32xf32> to vector<16x32xbf16>
    %c32 = arith.constant 32 : index
    %c0_20 = arith.constant 0 : index
    %71 = vector.load %arg2[%c32, %c0_20] : memref<192x128xbf16, #tpu.memory_space<vmem>>, vector<32x32xbf16>
    %cst_21 = arith.constant dense<0.000000e+00> : vector<16x32xf32>
    %72 = tpu.matmul %70, %71, %cst_21 {dimension_numbers = #tpu.dot_dimension_numbers<[1], [0], [0], [1], [0, 0, 1, 1], [], []>} : vector<16x32xbf16>, vector<32x32xbf16>, vector<16x32xf32> -> vector<16x32xf32>
    %73 = vector.extract_strided_slice %0 {offsets = [7, 0], sizes = [1, 32], strides = [1, 1]} : vector<16x128xf32> to vector<1x32xf32>
    %74 = vector.broadcast %73 : vector<1x32xf32> to vector<16x32xf32>
    %75 = arith.addf %72, %74 : vector<16x32xf32>
    %76 = arith.addf %25, %75 : vector<16x32xf32>
    %77 = vector.extract_strided_slice %0 {offsets = [2, 0], sizes = [1, 32], strides = [1, 1]} : vector<16x128xf32> to vector<1x32xf32>
    %78 = vector.extract_strided_slice %0 {offsets = [3, 0], sizes = [1, 32], strides = [1, 1]} : vector<16x128xf32> to vector<1x32xf32>
    %cst_22 = arith.constant dense<0.000000e+00> : vector<16xf32>
    %79 = vector.multi_reduction <add>, %76, %cst_22 [1] : vector<16x32xf32> to vector<16xf32>
    %80 = vector.shape_cast %79 : vector<16xf32> to vector<16x1xf32>
    %cst_23 = arith.constant 3.200000e+01 : f32
    %81 = vector.broadcast %cst_23 : f32 to vector<16x1xf32>
    %82 = arith.divf %80, %81 : vector<16x1xf32>
    %83 = vector.broadcast %82 : vector<16x1xf32> to vector<16x32xf32>
    %84 = arith.subf %76, %83 : vector<16x32xf32>
    %85 = arith.mulf %84, %84 : vector<16x32xf32>
    %cst_24 = arith.constant dense<0.000000e+00> : vector<16xf32>
    %86 = vector.multi_reduction <add>, %85, %cst_24 [1] : vector<16x32xf32> to vector<16xf32>
    %87 = vector.shape_cast %86 : vector<16xf32> to vector<16x1xf32>
    %cst_25 = arith.constant 3.200000e+01 : f32
    %88 = vector.broadcast %cst_25 : f32 to vector<16x1xf32>
    %89 = arith.divf %87, %88 : vector<16x1xf32>
    %90 = vector.broadcast %82 : vector<16x1xf32> to vector<16x32xf32>
    %91 = arith.subf %76, %90 : vector<16x32xf32>
    %cst_26 = arith.constant 9.99999996E-13 : f32
    %92 = vector.broadcast %cst_26 : f32 to vector<16x1xf32>
    %93 = arith.addf %89, %92 : vector<16x1xf32>
    %94 = math.rsqrt %93 : vector<16x1xf32>
    %95 = vector.broadcast %94 : vector<16x1xf32> to vector<16x32xf32>
    %96 = arith.mulf %91, %95 : vector<16x32xf32>
    %97 = vector.broadcast %77 : vector<1x32xf32> to vector<16x32xf32>
    %98 = arith.mulf %96, %97 : vector<16x32xf32>
    %99 = vector.broadcast %78 : vector<1x32xf32> to vector<16x32xf32>
    %100 = arith.addf %98, %99 : vector<16x32xf32>
    %101 = arith.truncf %100 : vector<16x32xf32> to vector<16x32xbf16>
    %c64 = arith.constant 64 : index
    %c0_27 = arith.constant 0 : index
    %102 = vector.load %arg2[%c64, %c0_27] : memref<192x128xbf16, #tpu.memory_space<vmem>>, vector<32x64xbf16>
    %cst_28 = arith.constant dense<0.000000e+00> : vector<16x64xf32>
    %103 = tpu.matmul %101, %102, %cst_28 {dimension_numbers = #tpu.dot_dimension_numbers<[1], [0], [0], [1], [0, 0, 1, 1], [], []>} : vector<16x32xbf16>, vector<32x64xbf16>, vector<16x64xf32> -> vector<16x64xf32>
    %104 = vector.extract_strided_slice %0 {offsets = [8, 0], sizes = [1, 64], strides = [1, 1]} : vector<16x128xf32> to vector<1x64xf32>
    %105 = vector.broadcast %104 : vector<1x64xf32> to vector<16x64xf32>
    %106 = arith.addf %103, %105 : vector<16x64xf32>
    %107 = arith.mulf %106, %106 : vector<16x64xf32>
    %108 = arith.mulf %106, %107 : vector<16x64xf32>
    %cst_29 = arith.constant 4.471500e-02 : f32
    %109 = vector.broadcast %cst_29 : f32 to vector<16x64xf32>
    %110 = arith.mulf %109, %108 : vector<16x64xf32>
    %111 = arith.addf %106, %110 : vector<16x64xf32>
    %cst_30 = arith.constant 0.797884583 : f32
    %112 = vector.broadcast %cst_30 : f32 to vector<16x64xf32>
    %113 = arith.mulf %112, %111 : vector<16x64xf32>
    %114 = math.tanh %113 : vector<16x64xf32>
    %cst_31 = arith.constant 1.000000e+00 : f32
    %115 = vector.broadcast %cst_31 : f32 to vector<16x64xf32>
    %116 = arith.addf %115, %114 : vector<16x64xf32>
    %cst_32 = arith.constant 5.000000e-01 : f32
    %117 = vector.broadcast %cst_32 : f32 to vector<16x64xf32>
    %118 = arith.mulf %117, %116 : vector<16x64xf32>
    %119 = arith.mulf %106, %118 : vector<16x64xf32>
    %120 = arith.truncf %119 : vector<16x64xf32> to vector<16x64xbf16>
    %c96 = arith.constant 96 : index
    %c0_33 = arith.constant 0 : index
    %121 = vector.load %arg2[%c96, %c0_33] : memref<192x128xbf16, #tpu.memory_space<vmem>>, vector<64x32xbf16>
    %cst_34 = arith.constant dense<0.000000e+00> : vector<16x32xf32>
    %122 = tpu.matmul %120, %121, %cst_34 {dimension_numbers = #tpu.dot_dimension_numbers<[1], [0], [0], [1], [0, 0, 1, 1], [], []>} : vector<16x64xbf16>, vector<64x32xbf16>, vector<16x32xf32> -> vector<16x32xf32>
    %123 = vector.extract_strided_slice %0 {offsets = [9, 0], sizes = [1, 32], strides = [1, 1]} : vector<16x128xf32> to vector<1x32xf32>
    %124 = vector.broadcast %123 : vector<1x32xf32> to vector<16x32xf32>
    %125 = arith.addf %122, %124 : vector<16x32xf32>
    %126 = arith.addf %100, %125 : vector<16x32xf32>
    %127 = vector.extract_strided_slice %0 {offsets = [4, 0], sizes = [1, 32], strides = [1, 1]} : vector<16x128xf32> to vector<1x32xf32>
    %128 = vector.extract_strided_slice %0 {offsets = [5, 0], sizes = [1, 32], strides = [1, 1]} : vector<16x128xf32> to vector<1x32xf32>
    %cst_35 = arith.constant dense<0.000000e+00> : vector<16xf32>
    %129 = vector.multi_reduction <add>, %126, %cst_35 [1] : vector<16x32xf32> to vector<16xf32>
    %130 = vector.shape_cast %129 : vector<16xf32> to vector<16x1xf32>
    %cst_36 = arith.constant 3.200000e+01 : f32
    %131 = vector.broadcast %cst_36 : f32 to vector<16x1xf32>
    %132 = arith.divf %130, %131 : vector<16x1xf32>
    %133 = vector.broadcast %132 : vector<16x1xf32> to vector<16x32xf32>
    %134 = arith.subf %126, %133 : vector<16x32xf32>
    %135 = arith.mulf %134, %134 : vector<16x32xf32>
    %cst_37 = arith.constant dense<0.000000e+00> : vector<16xf32>
    %136 = vector.multi_reduction <add>, %135, %cst_37 [1] : vector<16x32xf32> to vector<16xf32>
    %137 = vector.shape_cast %136 : vector<16xf32> to vector<16x1xf32>
    %cst_38 = arith.constant 3.200000e+01 : f32
    %138 = vector.broadcast %cst_38 : f32 to vector<16x1xf32>
    %139 = arith.divf %137, %138 : vector<16x1xf32>
    %140 = vector.broadcast %132 : vector<16x1xf32> to vector<16x32xf32>
    %141 = arith.subf %126, %140 : vector<16x32xf32>
    %cst_39 = arith.constant 9.99999996E-13 : f32
    %142 = vector.broadcast %cst_39 : f32 to vector<16x1xf32>
    %143 = arith.addf %139, %142 : vector<16x1xf32>
    %144 = math.rsqrt %143 : vector<16x1xf32>
    %145 = vector.broadcast %144 : vector<16x1xf32> to vector<16x32xf32>
    %146 = arith.mulf %141, %145 : vector<16x32xf32>
    %147 = vector.broadcast %127 : vector<1x32xf32> to vector<16x32xf32>
    %148 = arith.mulf %146, %147 : vector<16x32xf32>
    %149 = vector.broadcast %128 : vector<1x32xf32> to vector<16x32xf32>
    %150 = arith.addf %148, %149 : vector<16x32xf32>
    %151 = arith.truncf %150 : vector<16x32xf32> to vector<16x32xbf16>
    %c160 = arith.constant 160 : index
    %c0_40 = arith.constant 0 : index
    %152 = vector.load %arg2[%c160, %c0_40] : memref<192x128xbf16, #tpu.memory_space<vmem>>, vector<32x128xbf16>
    %cst_41 = arith.constant dense<0.000000e+00> : vector<16x128xf32>
    %153 = tpu.matmul %151, %152, %cst_41 {dimension_numbers = #tpu.dot_dimension_numbers<[1], [0], [0], [1], [0, 0, 1, 1], [], []>} : vector<16x32xbf16>, vector<32x128xbf16>, vector<16x128xf32> -> vector<16x128xf32>
    %154 = vector.extract_strided_slice %0 {offsets = [10, 0], sizes = [1, 128], strides = [1, 1]} : vector<16x128xf32> to vector<1x128xf32>
    %155 = vector.broadcast %154 : vector<1x128xf32> to vector<16x128xf32>
    %156 = arith.addf %153, %155 : vector<16x128xf32>
    %c0_42 = arith.constant 0 : index
    %c0_43 = arith.constant 0 : index
    %157 = vector.load %arg4[%c0_42, %c0_43] : memref<16x128xf32, #tpu.memory_space<vmem>>, vector<16x128xf32>
    tpu.vector_store %arg4[%c0_42, %c0_43], %156 {strides = array<i32>} : memref<16x128xf32, #tpu.memory_space<vmem>>, vector<16x128xf32>,
    return
  }
}

</mosaic_0001>

<bundles_post_ra>
// kernel: token_clf_forward.1
= control target key start
LH: loop header
LB: loop body
LE: loop exit
PB: predicated region body
PF: predicated region fallthrough
CT: control target
= control target key end

     0   :  { %vm22_vm0 = vcmask 261120   ;;  %v936_v15 = vmov 0.0   ;;  %vm937_vm1 = vmmov 0   ;;  %v50_v21 = vlaneseq  ;;  %s938_s24 = smov 80   ;;  %s939_s25 = smov 96   ;;  %s1148_s0 = inlined_call_operand.vmem [shape: f32[16,32], index: 0, kind: input, shape index: {}]   ;;  %s1149_s2 = inlined_call_operand.vmem [shape: bf16[192,128], index: 2, kind: input, shape index: {}]   ;;  %s1150_s3 = inlined_call_operand.vmem [shape: f32[16,128], index: 3, kind: input, shape index: {}]   ;;  %s1151_s1 = inlined_call_operand.vmem [shape: f32[16,16], index: 1, kind: input, shape index: {}]   ;;  %s1152_s4 = inlined_call_operand.vmem [shape: f32[16,128], index: 4, kind: output, shape index: {}]  }
   0x1   :  { %v20_v0 = vld [vmem:[%s1148_s0] sm:$0xff]  ;;  %v21_v1 = vld [vmem:[%s1148_s0 + $0x8] sm:$0xff]  ;;  %811 = vmatprep.subr.bf16.mxu0 %v936_v15  ;;  %819 = vmatprep.subr.bf16.mxu1 %v936_v15  ;;  %s940_s26 = smov 112   ;;  %vm135_vm2 = vcmask 130048   ;;  %s942_s5 = smov 48   ;;  %vm609_vm3 = vcmask 523264  }
   0x2   :  { %v23_v2 = vsel %vm22_vm0, %v20_v0, 0.0  ;;  %v26_v3 = vsel %vm22_vm0, %v21_v1, 0.0  ;;  %v892_v14 = vld [vmem:[%s1149_s2] sm:$0xff]   ;;  %v893_v16 = vld [vmem:[%s1149_s2 + $0x8] sm:$0xff]   ;;  %815 = vmatprep.mubr.msk.bf16.mxu0 %vm937_vm1, %v936_v15  ;;  %821 = vmatprep.mubr.msk.bf16.mxu1 %vm937_vm1, %v936_v15  ;;  %v993_v24 = vshrl.u32 %v50_v21, 7  ;;  %s943_s10 = smov 16  }
   0x3   :  { %24 = vadd.xlane.f32.xlu0 %v23_v2  ;;  %812 = vmatpush3.bf16.msra.mxu0 %v892_v14  ;;  %v999_v26 = vld [vmem:[%s1150_s3] sm:$0xff]  ;;  %v131_v55 = vld [vmem:[%s1151_s1 + $0x8] sm:$0xff] }
   0x4   :  { %813 = vmatprep.subr.bf16.mxu0 %v936_v15  ;;  %v52_v25 = vsub.s32 0, %v993_v24  ;;  %v58_v30 = vsub.s32 1, %v993_v24  ;;  %v125_v39 = vsub.s32 6, %v993_v24  ;;  %v130_v53 = vld [vmem:[%s1151_s1] sm:$0xff]  ;;  %s941_s1 = smov 64  }
   0x6   :  { %v53_v29 = vrot.slane %v999_v26, %v52_v25  ;;  %v59_v34 = vrot.slane %v999_v26, %v58_v30  ;;  %v126_v40 = vrot.slane %v999_v26, %v125_v39 }
   0x7   :  { %27 = vadd.xlane.f32.xlu0 %v26_v3  ;;  %814 = vmatpush3.bf16.msra.mxu0 %v893_v16 }
   0x8   :  { %825 = vmatprep.subr.bf16.mxu0 %v936_v15 }
  0x90   :  { %v25_v4 = vpop.xlane.xlu0 %24 }
  0x91   :  { %v30_v5 = vmul.f32 0.03125, %v25_v4 }
  0x93   :  { %v32_v6 = vsub.f32 %v20_v0, %v30_v5 }
  0x94   :  { %v28_v7 = vpop.xlane.xlu0 %27 }
  0x95   :  { %v31_v8 = vmul.f32 0.03125, %v28_v7  ;;  %v34_v9 = vmul.f32 %v32_v6, %v32_v6 }
  0x97   :  { %v33_v10 = vsub.f32 %v21_v1, %v31_v8  ;;  %v36_v11 = vsel %vm22_vm0, %v34_v9, 0.0 }
  0x98   :  { %37 = vadd.xlane.f32.xlu1 %v36_v11 }
  0x99   :  { %v35_v12 = vmul.f32 %v33_v10, %v33_v10 }
  0x9b   :  { %v39_v13 = vsel %vm22_vm0, %v35_v12, 0.0 }
  0x9c   :  { %40 = vadd.xlane.f32.xlu1 %v39_v13 }
 0x125   :  { %v38_v17 = vpop.xlane.xlu1 %37 }
 0x126   :  { %v42_v18 = vmul.f32 0.03125, %v38_v17 }
 0x128   :  { %v44_v19 = vadd.f32 1e-12, %v42_v18 }
 0x129   :  { %v41_v20 = vpop.xlane.xlu1 %40 }
 0x12a   :  { %904 = vrsqrt.f32 %v44_v19  ;;  %v43_v22 = vmul.f32 0.03125, %v41_v20 }
 0x12c   :  { %v45_v23 = vadd.f32 1e-12, %v43_v22 }
 0x12e   :  { %906 = vrsqrt.f32 %v45_v23 }
 0x134   :  { %v905_v27 = vpop.eup %904 }
 0x135   :  { %v48_v28 = vmul.f32 %v905_v27, %v32_v6 }
 0x137   :  { %v54_v33 = vmul.f32 %v53_v29, %v48_v28 }
 0x138   :  { %v907_v31 = vpop.eup %906 }
 0x139   :  { %v49_v32 = vmul.f32 %v907_v31, %v33_v10  ;;  %v1008_v36 = vadd.f32 %v59_v34, %v54_v33 }
 0x13b   :  { %v55_v35 = vmul.f32 %v53_v29, %v49_v32 }
 0x13d   :  { %v1010_v37 = vadd.f32 %v59_v34, %v55_v35 }
 0x13f   :  { %v62_v38 = vpack.c.bf16 %v1010_v37, %v1008_v36 }
 0x141   :  { %816 = vmatmul.mubr.msk.bf16.vlgmr.msra.gmra.mrb[0].mxu0 %vm22_vm0, %v62_v38 }
 0x142   :  { %827 = vmatprep.mubr.msk.bf16.mxu0 %vm937_vm1, %v936_v15 }
 0x214   :  { %v116_v41 = vpop.f32.mrb[0].mxu0 }
 0x215   :  { %v817_v42 = vpop.f32.mrb[1].mxu0  ;;  %v127_v44 = vadd.f32 %v126_v40, %v116_v41 }
 0x216   :  { %v119_v43 = vpop.f32.mrb[2].mxu0 }
 0x217   :  { %v128_v45 = vadd.f32 %v126_v40, %v119_v43  ;;  %v818_v46 = vpop.f32.mrb[3].mxu0 }
 0x219   :  { %v1019_v47 = vpack.c.bf16 %v128_v45, %v127_v44 }
 0x21b   :  { %255 = vrot.lane.b32.xlu1 %v1019_v47, %s938_s24  ;;  %133 = vrot.lane.b32.xlu0 %v1019_v47, %s939_s25 }
 0x21f   :  { %253 = vrot.lane.b32.xlu1 %v1019_v47, %s940_s26 }
 0x28d   :  { %v134_v48 = vpop.permute.xlu0 %133  ;;  %v256_v50 = vpop.permute.xlu1 %255 }
 0x28e   :  { %v140_v49 = vsel %vm135_vm2, %v134_v48, 0  ;;  %v261_v51 = vsel %vm135_vm2, %v256_v50, 0  ;;  %v894_v50 = vld [vmem:[%s1149_s2 + $0x10] sm:$0xff]  }
 0x28f   :  { %820 = vmatpush3.bf16.xpose.msra.mxu1 %v140_v49 }
 0x290   :  { %831 = vmatprep.subr.bf16.mxu1 %v936_v15 }
 0x291   :  { %v254_v52 = vpop.permute.xlu1 %253 }
 0x296   :  { %822 = vmatmul.mubr.msk.bf16.vlgmr.msra.gmra.mrb[0].mxu1 %vm135_vm2, %v1019_v47 }
 0x297   :  { %832 = vmatpush3.bf16.xpose.msra.mxu1 %v261_v51  ;;  %833 = vmatprep.mubr.msk.bf16.mxu1 %vm937_vm1, %v936_v15 }
 0x298   :  { %843 = vmatprep.subr.bf16.mxu1 %v936_v15 }
 0x29e   :  { %834 = vmatmul.mubr.msk.bf16.vlgmr.msra.gmra.mrb[4].mxu1 %vm135_vm2, %v254_v52 }
 0x29f   :  { %847 = vmatprep.mubr.msk.bf16.mxu1 %vm937_vm1, %v936_v15  ;;  %844 = vmatpush3.bf16.msra.mxu1 %v894_v50 }
 0x2a0   :  { %845 = vmatprep.subr.bf16.mxu1 %v936_v15 }
 0x369   :  { %v176_v54 = vpop.f32.mrb[0].mxu1 }
 0x36a   :  { %v177_v56 = vadd.f32 %v176_v54, %v130_v53  ;;  %v823_v57 = vpop.f32.mrb[1].mxu1 }
 0x36b   :  { %v179_v58 = vpop.f32.mrb[2].mxu1 }
 0x36c   :  { %v180_v59 = vadd.f32 %v179_v58, %v131_v55  ;;  %v824_v60 = vpop.f32.mrb[3].mxu1  ;;  %v183_v61 = vsel %vm135_vm2, %v177_v56, -inf }
 0x36d   :  { %184 = vmax.xlane.f32.xlu1 %v183_v61 }
 0x36e   :  { %v186_v62 = vsel %vm135_vm2, %v180_v59, -inf }
 0x36f   :  { %187 = vmax.xlane.f32.xlu0 %v186_v62 }
 0x371   :  { %v297_v63 = vpop.f32.mrb[4].mxu1 }
 0x372   :  { %v298_v0 = vadd.f32 %v297_v63, %v130_v53  ;;  %v835_v1 = vpop.f32.mrb[5].mxu1 }
 0x373   :  { %v300_v2 = vpop.f32.mrb[6].mxu1 }
 0x374   :  { %v301_v3 = vadd.f32 %v300_v2, %v131_v55  ;;  %v836_v4 = vpop.f32.mrb[7].mxu1  ;;  %v304_v5 = vsel %vm135_vm2, %v298_v0, -inf  ;;  %v895_v55 = vld [vmem:[%s1149_s2 + $0x18] sm:$0xff]  }
 0x375   :  { %305 = vmax.xlane.f32.xlu0 %v304_v5  ;;  %846 = vmatpush3.bf16.msra.mxu1 %v895_v55  ;;  %v1115_v55 = vld [vmem:[%s1150_s3 + $0x8] sm:$0xff] }
 0x376   :  { %v307_v6 = vsel %vm135_vm2, %v301_v3, -inf  ;;  %859 = vmatprep.subr.bf16.mxu1 %v936_v15 }
 0x379   :  { %308 = vmax.xlane.f32.xlu0 %v307_v6 }
 0x3fa   :  { %v185_v7 = vpop.xlane.xlu1 %184 }
 0x3fb   :  { %v189_v8 = vsub.f32 %v177_v56, %v185_v7 }
 0x3fc   :  { %v188_v9 = vpop.xlane.xlu0 %187 }
 0x3fd   :  { %v191_v10 = vmul.f32 1.442695, %v189_v8  ;;  %v190_v11 = vsub.f32 %v180_v59, %v188_v9 }
 0x3ff   :  { %908 = vpow2.f32 %v191_v10  ;;  %v193_v12 = vmul.f32 1.442695, %v190_v11 }
 0x401   :  { %910 = vpow2.f32 %v193_v12 }
 0x402   :  { %v306_v13 = vpop.xlane.xlu0 %305 }
 0x403   :  { %v310_v14 = vsub.f32 %v298_v0, %v306_v13 }
 0x405   :  { %v312_v16 = vmul.f32 1.442695, %v310_v14 }
 0x406   :  { %v309_v17 = vpop.xlane.xlu0 %308 }
 0x407   :  { %912 = vpow2.f32 %v312_v16  ;;  %v311_v18 = vsub.f32 %v301_v3, %v309_v17  ;;  %v391_v3 = vsub.s32 7, %v993_v24 }
 0x409   :  { %v909_v19 = vpop.eup %908  ;;  %v314_v20 = vmul.f32 1.442695, %v311_v18  ;;  %v392_v4 = vrot.slane %v999_v26, %v391_v3 }
 0x40a   :  { %v195_v21 = vsel %vm135_vm2, %v909_v19, 0.0 }
 0x40b   :  { %v911_v22 = vpop.eup %910  ;;  %914 = vpow2.f32 %v314_v20  ;;  %196 = vadd.xlane.f32.xlu1 %v195_v21 }
 0x40c   :  { %v198_v23 = vsel %vm135_vm2, %v911_v22, 0.0 }
 0x40d   :  { %199 = vadd.xlane.f32.xlu0 %v198_v23 }
 0x411   :  { %v913_v27 = vpop.eup %912 }
 0x412   :  { %v316_v28 = vsel %vm135_vm2, %v913_v27, 0.0 }
 0x413   :  { %317 = vadd.xlane.f32.xlu1 %v316_v28  ;;  %v897_v28 = vld [vmem:[%s1149_s2 + $0x28] sm:$0xff]  }
 0x415   :  { %v915_v29 = vpop.eup %914 }
 0x416   :  { %v319_v31 = vsel %vm135_vm2, %v915_v29, 0.0 }
 0x417   :  { %320 = vadd.xlane.f32.xlu0 %v319_v31 }
 0x424   :  { %206 = vrot.lane.b32.xlu1 %v1019_v47, %s941_s1 }
 0x42d   :  { %327 = vrot.lane.b32.xlu0 %v1019_v47, %s942_s5 }
 0x498   :  { %v197_v32 = vpop.xlane.xlu1 %196 }
 0x499   :  { %916 = vrcp.f32 %v197_v32 }
 0x49a   :  { %v200_v33 = vpop.xlane.xlu0 %199 }
 0x49b   :  { %918 = vrcp.f32 %v200_v33 }
 0x4a0   :  { %v318_v34 = vpop.xlane.xlu1 %317 }
 0x4a1   :  { %920 = vrcp.f32 %v318_v34 }
 0x4a3   :  { %v917_v35 = vpop.eup %916 }
 0x4a4   :  { %v207_v38 = vpop.permute.xlu1 %206  ;;  %v321_v39 = vpop.xlane.xlu0 %320  ;;  %v203_v41 = vmul.f32 %v917_v35, %v909_v19 }
 0x4a5   :  { %v919_v40 = vpop.eup %918  ;;  %922 = vrcp.f32 %v321_v39  ;;  %826 = vmatpush3.bf16.msra.mxu0 %v207_v38  ;;  %v479_v38 = vsub.s32 2, %v993_v24 }
 0x4a6   :  { %v204_v42 = vmul.f32 %v919_v40, %v911_v22  ;;  %837 = vmatprep.subr.bf16.mxu0 %v936_v15  ;;  %v485_v40 = vsub.s32 3, %v993_v24 }
 0x4a7   :  { %v480_v39 = vrot.slane %v999_v26, %v479_v38 }
 0x4a8   :  { %v328_v43 = vpop.permute.xlu0 %327  ;;  %v205_v44 = vpack.c.bf16 %v204_v42, %v203_v41 }
 0x4aa   :  { %828 = vmatmul.mubr.msk.bf16.vlgmr.msra.gmra.mrb[4].mxu0 %vm135_vm2, %v205_v44 }
 0x4ab   :  { %838 = vmatpush3.bf16.msra.mxu0 %v328_v43  ;;  %839 = vmatprep.mubr.msk.bf16.mxu0 %vm937_vm1, %v936_v15  ;;  %v921_v45 = vpop.eup %920 }
 0x4ac   :  { %851 = vmatprep.subr.bf16.mxu0 %v936_v15  ;;  %v324_v47 = vmul.f32 %v921_v45, %v913_v27 }
 0x4af   :  { %v923_v46 = vpop.eup %922 }
 0x4b0   :  { %v325_v48 = vmul.f32 %v923_v46, %v915_v29  ;;  %v486_v46 = vrot.slane %v999_v26, %v485_v40 }
 0x4b2   :  { %v326_v49 = vpack.c.bf16 %v325_v48, %v324_v47 }
 0x4b4   :  { %840 = vmatmul.mubr.msk.bf16.vlgmr.msra.gmra.mrb[8].mxu0 %vm135_vm2, %v326_v49 }
 0x4b5   :  { %855 = vmatprep.mubr.msk.bf16.mxu0 %vm937_vm1, %v936_v15 }
 0x57d   :  { %v246_v51 = vpop.f32.mrb[4].mxu0 }
 0x57e   :  { %v829_v52 = vpop.f32.mrb[5].mxu0 }
 0x57f   :  { %v249_v53 = vpop.f32.mrb[6].mxu0  ;;  %v899_v52 = vld [vmem:[%s1149_s2 + $0x38] sm:$0xff]  }
 0x580   :  { %v830_v54 = vpop.f32.mrb[7].mxu0 }
 0x581   :  { %v901_v54 = vld [vmem:[%s1149_s2 + $0x48] sm:$0xff]  }
 0x587   :  { %v367_v56 = vpop.f32.mrb[8].mxu0 }
 0x588   :  { %v841_v57 = vpop.f32.mrb[9].mxu0 }
 0x589   :  { %v370_v58 = vpop.f32.mrb[10].mxu0 }
 0x58a   :  { %v887_v59 = vpack.i.bf16 %v370_v58, %v367_v56  ;;  %v842_v60 = vpop.f32.mrb[11].mxu0  ;;  %v497_v56 = vrot.slane %v1115_v55, %v52_v25 }
 0x58c   :  { %888 = vrot.lane.b32.xlu1 %v887_v59, %s943_s10 }
 0x5fe   :  { %v889_v61 = vpop.permute.xlu1 %888 }
 0x5ff   :  { %v891_v62 = vunpack.i.h.bf16 %v889_v61  ;;  %v890_v63 = vunpack.i.l.bf16 %v889_v61 }
 0x601   :  { %v383_v0 = vsel %vm135_vm2, %v249_v53, %v891_v62  ;;  %v382_v1 = vsel %vm135_vm2, %v246_v51, %v890_v63  ;;  %v898_v51 = vld [vmem:[%s1149_s2 + $0x30] sm:$0xff]   ;;  %v900_v53 = vld [vmem:[%s1149_s2 + $0x40] sm:$0xff]  }
 0x602   :  { %v384_v2 = vpack.c.bf16 %v383_v0, %v382_v1 }
 0x604   :  { %848 = vmatmul.mubr.msk.bf16.vlgmr.msra.gmra.mrb[8].mxu1 %vm22_vm0, %v384_v2 }
 0x605   :  { %867 = vmatprep.mubr.msk.bf16.mxu1 %vm937_vm1, %v936_v15  ;;  %860 = vmatpush3.bf16.msra.mxu1 %v898_v51  ;;  %v684_v51 = vsub.s32 4, %v993_v24 }
 0x606   :  { %861 = vmatprep.subr.bf16.mxu1 %v936_v15 }
 0x609   :  { %862 = vmatpush3.bf16.msra.mxu1 %v899_v52  ;;  %v685_v52 = vrot.slane %v999_v26, %v684_v51 }
 0x60a   :  { %863 = vmatprep.subr.bf16.mxu1 %v936_v15 }
 0x60d   :  { %864 = vmatpush3.bf16.msra.mxu1 %v900_v53  ;;  %v690_v53 = vsub.s32 5, %v993_v24 }
 0x60e   :  { %865 = vmatprep.subr.bf16.mxu1 %v936_v15 }
 0x611   :  { %866 = vmatpush3.bf16.msra.mxu1 %v901_v54 }
 0x6d7   :  { %v442_v5 = vpop.f32.mrb[8].mxu1 }
 0x6d8   :  { %v443_v6 = vadd.f32 %v442_v5, %v392_v4  ;;  %v849_v7 = vpop.f32.mrb[9].mxu1 }
 0x6d9   :  { %v445_v8 = vpop.f32.mrb[10].mxu1 }
 0x6da   :  { %v446_v9 = vadd.f32 %v445_v8, %v392_v4  ;;  %v850_v10 = vpop.f32.mrb[11].mxu1  ;;  %v449_v11 = vadd.f32 %v443_v6, %v1008_v36 }
 0x6dc   :  { %v451_v12 = vsel %vm22_vm0, %v449_v11, 0.0  ;;  %v450_v13 = vadd.f32 %v446_v9, %v1010_v37  ;;  %v896_v37 = vld [vmem:[%s1149_s2 + $0x20] sm:$0xff]  }
 0x6dd   :  { %452 = vadd.xlane.f32.xlu1 %v451_v12  ;;  %852 = vmatpush3.bf16.msra.mxu0 %v896_v37 }
 0x6de   :  { %v454_v14 = vsel %vm22_vm0, %v450_v13, 0.0  ;;  %853 = vmatprep.subr.bf16.mxu0 %v936_v15 }
 0x6df   :  { %455 = vadd.xlane.f32.xlu0 %v454_v14 }
 0x6e1   :  { %854 = vmatpush3.bf16.msra.mxu0 %v897_v28 }
 0x6e2   :  { %871 = vmatprep.subr.bf16.mxu0 %v936_v15 }
 0x76a   :  { %v453_v16 = vpop.xlane.xlu1 %452 }
 0x76b   :  { %v457_v17 = vmul.f32 0.03125, %v453_v16 }
 0x76c   :  { %v456_v18 = vpop.xlane.xlu0 %455 }
 0x76d   :  { %v459_v19 = vsub.f32 %v449_v11, %v457_v17  ;;  %v458_v20 = vmul.f32 0.03125, %v456_v18  ;;  %v584_v18 = vrot.slane %v1115_v55, %v58_v30 }
 0x76f   :  { %v460_v21 = vsub.f32 %v450_v13, %v458_v20  ;;  %v461_v22 = vmul.f32 %v459_v19, %v459_v19 }
 0x771   :  { %v463_v23 = vsel %vm22_vm0, %v461_v22, 0.0  ;;  %v462_v27 = vmul.f32 %v460_v21, %v460_v21 }
 0x772   :  { %464 = vadd.xlane.f32.xlu0 %v463_v23 }
 0x773   :  { %v466_v36 = vsel %vm22_vm0, %v462_v27, 0.0 }
 0x774   :  { %467 = vadd.xlane.f32.xlu1 %v466_v36 }
 0x7ff   :  { %v465_v29 = vpop.xlane.xlu0 %464 }
 0x800   :  { %v469_v31 = vmul.f32 0.03125, %v465_v29 }
 0x801   :  { %v468_v32 = vpop.xlane.xlu1 %467 }
 0x802   :  { %v471_v33 = vadd.f32 1e-12, %v469_v31  ;;  %v470_v34 = vmul.f32 0.03125, %v468_v32 }
 0x804   :  { %924 = vrsqrt.f32 %v471_v33  ;;  %v472_v35 = vadd.f32 1e-12, %v470_v34 }
 0x806   :  { %926 = vrsqrt.f32 %v472_v35 }
 0x80e   :  { %v925_v41 = vpop.eup %924 }
 0x80f   :  { %v475_v42 = vmul.f32 %v925_v41, %v459_v19 }
 0x810   :  { %v927_v43 = vpop.eup %926 }
 0x811   :  { %v481_v44 = vmul.f32 %v480_v39, %v475_v42  ;;  %v476_v45 = vmul.f32 %v927_v43, %v460_v21  ;;  %v902_v43 = vld [vmem:[%s1149_s2 + $0x50] sm:$0xff]  }
 0x813   :  { %v482_v47 = vmul.f32 %v480_v39, %v476_v45  ;;  %v487_v48 = vadd.f32 %v486_v46, %v481_v44  ;;  %v903_v44 = vld [vmem:[%s1149_s2 + $0x58] sm:$0xff]  }
 0x815   :  { %v488_v49 = vadd.f32 %v486_v46, %v482_v47 }
 0x817   :  { %v489_v50 = vpack.c.bf16 %v488_v49, %v487_v48 }
 0x819   :  { %856 = vmatmul.mubr.msk.bf16.vlgmr.msra.gmra.mrb[12].mxu0 %vm22_vm0, %v489_v50 }
 0x81a   :  { %875 = vmatprep.mubr.msk.bf16.mxu0 %vm937_vm1, %v936_v15  ;;  %872 = vmatpush3.bf16.msra.mxu0 %v902_v43 }
 0x81b   :  { %873 = vmatprep.subr.bf16.mxu0 %v936_v15 }
 0x81e   :  { %874 = vmatpush3.bf16.msra.mxu0 %v903_v44 }
 0x8ec   :  { %v547_v57 = vpop.f32.mrb[12].mxu0 }
 0x8ed   :  { %v548_v58 = vadd.f32 %v547_v57, %v497_v56  ;;  %v857_v59 = vpop.f32.mrb[13].mxu0 }
 0x8ee   :  { %v550_v60 = vpop.f32.mrb[14].mxu0  ;;  %v691_v59 = vrot.slane %v999_v26, %v690_v53 }
 0x8ef   :  { %v554_v61 = vmul.f32 %v548_v58, %v548_v58  ;;  %v551_v62 = vadd.f32 %v550_v60, %v497_v56  ;;  %v858_v63 = vpop.f32.mrb[15].mxu0 }
 0x8f1   :  { %v556_v0 = vmul.f32 %v554_v61, %v548_v58  ;;  %v555_v1 = vmul.f32 %v551_v62, %v551_v62 }
 0x8f3   :  { %v558_v2 = vmul.f32 0.044715, %v556_v0  ;;  %v557_v3 = vmul.f32 %v555_v1, %v551_v62  ;;  %v702_v0 = vrot.slane %v1115_v55, %v479_v38 }
 0x8f5   :  { %v560_v4 = vadd.f32 %v558_v2, %v548_v58  ;;  %v559_v5 = vmul.f32 0.044715, %v557_v3 }
 0x8f7   :  { %v562_v6 = vmul.f32 0.7978846, %v560_v4  ;;  %v561_v7 = vadd.f32 %v559_v5, %v551_v62 }
 0x8f9   :  { %928 = vtanh.f32 %v562_v6  ;;  %v563_v8 = vmul.f32 0.7978846, %v561_v7 }
 0x8fb   :  { %930 = vtanh.f32 %v563_v8 }
 0x903   :  { %v929_v9 = vpop.eup %928 }
 0x904   :  { %v566_v25 = vadd.f32 1.0, %v929_v9 }
 0x905   :  { %v931_v10 = vpop.eup %930 }
 0x906   :  { %v568_v11 = vmul.f32 0.5, %v566_v25  ;;  %v567_v12 = vadd.f32 1.0, %v931_v10 }
 0x908   :  { %v569_v13 = vmul.f32 0.5, %v567_v12  ;;  %v570_v14 = vmul.f32 %v568_v11, %v548_v58 }
 0x90a   :  { %v571_v16 = vmul.f32 %v569_v13, %v551_v62 }
 0x90c   :  { %v572_v17 = vpack.c.bf16 %v571_v16, %v570_v14 }
 0x90e   :  { %868 = vmatmul.mubr.msk.bf16.vlgmr.msra.gmra.mrb[12].mxu1 %vm609_vm3, %v572_v17 }
 0x9e1   :  { %v647_v19 = vpop.f32.mrb[12].mxu1 }
 0x9e2   :  { %v648_v20 = vadd.f32 %v647_v19, %v584_v18  ;;  %v869_v21 = vpop.f32.mrb[13].mxu1 }
 0x9e3   :  { %v650_v22 = vpop.f32.mrb[14].mxu1 }
 0x9e4   :  { %v651_v23 = vadd.f32 %v650_v22, %v584_v18  ;;  %v870_v27 = vpop.f32.mrb[15].mxu1  ;;  %v654_v36 = vadd.f32 %v648_v20, %v487_v48 }
 0x9e6   :  { %v656_v37 = vsel %vm22_vm0, %v654_v36, 0.0  ;;  %v655_v28 = vadd.f32 %v651_v23, %v488_v49 }
 0x9e7   :  { %657 = vadd.xlane.f32.xlu0 %v656_v37 }
 0x9e8   :  { %v659_v29 = vsel %vm22_vm0, %v655_v28, 0.0 }
 0x9e9   :  { %660 = vadd.xlane.f32.xlu1 %v659_v29 }
 0xa74   :  { %v658_v31 = vpop.xlane.xlu0 %657 }
 0xa75   :  { %v662_v32 = vmul.f32 0.03125, %v658_v31 }
 0xa76   :  { %v661_v33 = vpop.xlane.xlu1 %660 }
 0xa77   :  { %v664_v34 = vsub.f32 %v654_v36, %v662_v32  ;;  %v663_v35 = vmul.f32 0.03125, %v661_v33 }
 0xa79   :  { %v665_v30 = vsub.f32 %v655_v28, %v663_v35  ;;  %v666_v39 = vmul.f32 %v664_v34, %v664_v34 }
 0xa7b   :  { %v668_v40 = vsel %vm22_vm0, %v666_v39, 0.0  ;;  %v667_v41 = vmul.f32 %v665_v30, %v665_v30 }
 0xa7c   :  { %669 = vadd.xlane.f32.xlu0 %v668_v40 }
 0xa7d   :  { %v671_v42 = vsel %vm22_vm0, %v667_v41, 0.0 }
 0xa7e   :  { %672 = vadd.xlane.f32.xlu1 %v671_v42 }
 0xb09   :  { %v670_v45 = vpop.xlane.xlu0 %669 }
 0xb0a   :  { %v674_v46 = vmul.f32 0.03125, %v670_v45 }
 0xb0b   :  { %v673_v47 = vpop.xlane.xlu1 %672 }
 0xb0c   :  { %v676_v48 = vadd.f32 1e-12, %v674_v46  ;;  %v675_v49 = vmul.f32 0.03125, %v673_v47 }
 0xb0e   :  { %932 = vrsqrt.f32 %v676_v48  ;;  %v677_v50 = vadd.f32 1e-12, %v675_v49 }
 0xb10   :  { %934 = vrsqrt.f32 %v677_v50 }
 0xb18   :  { %v933_v54 = vpop.eup %932 }
 0xb19   :  { %v680_v56 = vmul.f32 %v933_v54, %v664_v34 }
 0xb1a   :  { %v935_v57 = vpop.eup %934 }
 0xb1b   :  { %v686_v58 = vmul.f32 %v685_v52, %v680_v56  ;;  %v681_v15 = vmul.f32 %v935_v57, %v665_v30 }
 0xb1d   :  { %v687_v60 = vmul.f32 %v685_v52, %v681_v15  ;;  %v692_v61 = vadd.f32 %v691_v59, %v686_v58 }
 0xb1f   :  { %v693_v62 = vadd.f32 %v691_v59, %v687_v60 }
 0xb21   :  { %v694_v63 = vpack.c.bf16 %v693_v62, %v692_v61 }
 0xb23   :  { %876 = vmatmul.mubr.msk.bf16.vlgmr.msra.gmra.mrb[16].mxu0 %vm22_vm0, %v694_v63 }
 0xbf6   :  { %v752_v1 = vpop.f32.mrb[16].mxu0 }
 0xbf7   :  { %v753_v2 = vadd.f32 %v752_v1, %v702_v0  ;;  %v877_v3 = vpop.f32.mrb[17].mxu0 }
 0xbf8   :  { %v755_v4 = vpop.f32.mrb[18].mxu0 }
 0xbf9   :  { %759 = vst [vmem:[%s1152_s4] sm:$0xff] %v753_v2  ;;  %v756_v5 = vadd.f32 %v755_v4, %v702_v0  ;;  %v878_v26 = vpop.f32.mrb[19].mxu0 }
 0xbfb   :  { %760 = vst [vmem:[%s1152_s4 + $0x8] sm:$0xff] %v756_v5 }

</bundles_post_ra>
